<compile_context>
chip_gen: v7x
topology: tpu7x:2x2x1
jax: 0.10.0
libtpu: 0.0.40
codegen_flags: <defaults>
</compile_context>

<pallas_src>
import functools
import math

import jax
import jax.numpy as jnp
from jax import lax
from jax.experimental import pallas as pl
from jax.experimental.pallas import tpu as pltpu


def _leaky(z):
    return jnp.where(z > 0, z, 0.2 * z)


def _edge_probs(d, dsum, dmin, inv_e):
    """exp(scores - global_max) for a (H, T) tile of edge distances."""
    mean = dsum * inv_e                          # (H, 1) per-head mean over edges
    smax = jnp.max(-_leaky(dmin + mean))         # exact global max of -leaky(d + mean)
    scores = -_leaky(d + mean)                   # (H, T)
    return jnp.exp(scores - smax)


def _dist_gather_kernel(e_true, ids_ref, src_ref, trg_ref, x_ref, w_ref,
                        d_ref, xsrc_ref, dsum_ref, dmin_ref):
    """Per edge tile: fused src/trg gather (edges on lanes), distances (H,T), running stats."""
    i = pl.program_id(0)
    t = src_ref.shape[1]

    x = x_ref[...]                               # (N, F) f32
    ids = ids_ref[...]                           # (N, 1) int32 node ids (precomputed)

    # Fused one-hot gather, transposed so edges stay on lanes:
    #   feats_T = x^T @ [oh_src ; oh_trg]  ->  (F, 2T)
    idx_cat = jnp.concatenate([src_ref[...], trg_ref[...]], axis=1)     # (1, 2T)
    oh = (ids == idx_cat).astype(jnp.float32)                           # (N, 2T)
    feats_t = lax.dot_general(x, oh, (((0,), (0,)), ((), ())),
                              preferred_element_type=jnp.float32)       # (F, 2T)
    x_src_t = feats_t[:, :t]                                            # (F, T)
    x_trg_t = feats_t[:, t:]                                            # (F, T)
    xsrc_ref[...] = x_src_t                                             # lane-dense store

    # edge distances: sum_f (x_trg - x_src)^2 * edge_w^2 * dist_w  ->  (H, T)
    diff = x_trg_t - x_src_t
    dsq = diff * diff                                                   # (F, T)
    d = lax.dot_general(w_ref[...], dsq, (((1,), (0,)), ((), ())),
                        preferred_element_type=jnp.float32)             # (H, T)
    d_ref[...] = d

    # masked running stats (padded lanes excluded)
    lane = lax.broadcasted_iota(jnp.int32, (1, t), 1)
    valid = (i * t + lane) < e_true                                     # (1, T)

    @pl.when(i == 0)
    def _():
        dsum_ref[...] = jnp.zeros_like(dsum_ref)
        dmin_ref[...] = jnp.full(dmin_ref.shape, jnp.inf, dmin_ref.dtype)

    dsum_ref[...] += jnp.sum(jnp.where(valid, d, 0.0), axis=1, keepdims=True)
    dmin_ref[...] = jnp.minimum(
        dmin_ref[...], jnp.min(jnp.where(valid, d, jnp.inf), axis=1, keepdims=True))


def _softmax_kernel(e_true, inv_e, ids_ref, d_ref, trg_ref, dsum_ref, dmin_ref,
                    attn_ref, denom_ref):
    """Fused neighborhood softmax.

    pass 0: accumulate per-target-node denominator into a persistent VMEM scratch (H,N).
    pass 1: gather the denominator back per edge and normalize -> attn (H,T).
    """
    p_ax = pl.program_id(0)
    i = pl.program_id(1)
    t = d_ref.shape[1]

    probs = _edge_probs(d_ref[...], dsum_ref[...], dmin_ref[...], inv_e)     # (H, T)
    oh_trg = (ids_ref[...] == trg_ref[...]).astype(jnp.float32)              # (N, T)

    @pl.when(p_ax == 0)
    def _():
        @pl.when(i == 0)
        def _():
            denom_ref[...] = jnp.zeros_like(denom_ref)

        lane = lax.broadcasted_iota(jnp.int32, (1, t), 1)
        valid = (i * t + lane) < e_true
        pm = jnp.where(valid, probs, 0.0)
        # scatter-add over edges == (H,T) x (N,T)^T contraction on the edge dim
        denom_ref[...] += lax.dot_general(pm, oh_trg, (((1,), (1,)), ((), ())),
                                          preferred_element_type=jnp.float32)
        attn_ref[...] = jnp.zeros_like(attn_ref)       # deterministic pass-0 writeback

    @pl.when(p_ax == 1)
    def _():
        # gather denominator back to edges: (H,N) x (N,T)
        denom_e = lax.dot_general(denom_ref[...], oh_trg, (((1,), (0,)), ((), ())),
                                  preferred_element_type=jnp.float32)        # (H, T)
        attn_ref[...] = probs / (denom_e + 1e-16)


def attention_distance_forward(nodes_features, edge_index,
                               edge_dims_weights, distance_dims_weights,
                               *, tile_e=None):
    """Forward of Attention_Distance. Returns (attentions_per_edge (E,H,1), x_src (E,1,F))."""
    N = nodes_features.shape[0]
    F = nodes_features.shape[-1]
    x = nodes_features.reshape(N, F).astype(jnp.float32)
    H = edge_dims_weights.shape[1]
    ew = edge_dims_weights.reshape(H, F).astype(jnp.float32)
    dw = distance_dims_weights.reshape(H, F).astype(jnp.float32)
    w = ew * ew * dw                                   # folded (H, F) weight

    E = edge_index.shape[1]
    trg = edge_index[0].astype(jnp.int32)
    src = edge_index[1].astype(jnp.int32)

    # ---- per-generation VMEM budget (v5e/v6e: 128 MiB, v7x: 64 MiB per TC) ----
    try:
        vmem_cap = int(pltpu.get_tpu_info().vmem_capacity_bytes)
    except Exception:
        vmem_cap = 64 * 1024 * 1024
    vmem_limit = min((vmem_cap * 3) // 4, 100 * 1024 * 1024)

    # ---- edge-tile size from a full VMEM accounting (one-hot + feats + diff/dsq + outputs) ----
    if tile_e is None:
        fixed = 2 * N * F * 4 + 64 * 1024                      # resident x (double-buffered) + slack
        per_edge = 8 * N + 24 * F + 512                        # oh, feats_T, diff/dsq, out buffers
        budget = max(0, vmem_limit // 2 - fixed)
        tile_e = (budget // per_edge // 128) * 128
        tile_e = max(128, min(4096, tile_e))
    e_ceil = pl.cdiv(E, 128) * 128
    tile_e = min(tile_e, e_ceil)
    e_pad = pl.cdiv(E, tile_e) * tile_e
    g = e_pad // tile_e

    pad = e_pad - E
    src_p = jnp.pad(src, (0, pad)).reshape(1, e_pad)   # lane-dense indices
    trg_p = jnp.pad(trg, (0, pad)).reshape(1, e_pad)
    node_ids = jnp.arange(N, dtype=jnp.int32).reshape(N, 1)   # precomputed one-hot column ids

    cp1 = pltpu.CompilerParams(dimension_semantics=("arbitrary",),
                               vmem_limit_bytes=int(vmem_limit))
    cp2 = pltpu.CompilerParams(dimension_semantics=("arbitrary", "arbitrary"),
                               vmem_limit_bytes=int(vmem_limit))

    # ---- Kernel 1: edge distances (H,E), fused src/trg gather (F,E), global sum/min stats ----
    d_he, x_src_t, dsum, dmin = pl.pallas_call(
        functools.partial(_dist_gather_kernel, E),
        grid=(g,),
        in_specs=[
            pl.BlockSpec((N, 1), lambda i: (0, 0)),        # node ids (resident)
            pl.BlockSpec((1, tile_e), lambda i: (0, i)),   # src indices
            pl.BlockSpec((1, tile_e), lambda i: (0, i)),   # trg indices
            pl.BlockSpec((N, F), lambda i: (0, 0)),        # node features (resident)
            pl.BlockSpec((H, F), lambda i: (0, 0)),        # folded edge_w^2*dist_w
        ],
        out_specs=(
            pl.BlockSpec((H, tile_e), lambda i: (0, i)),   # distances, edges on lanes
            pl.BlockSpec((F, tile_e), lambda i: (0, i)),   # gathered x_src, edges on lanes
            pl.BlockSpec((H, 1), lambda i: (0, 0)),        # running sum (accumulator)
            pl.BlockSpec((H, 1), lambda i: (0, 0)),        # running min (accumulator)
        ),
        out_shape=(
            jax.ShapeDtypeStruct((H, e_pad), jnp.float32),
            jax.ShapeDtypeStruct((F, e_pad), jnp.float32),
            jax.ShapeDtypeStruct((H, 1), jnp.float32),
            jax.ShapeDtypeStruct((H, 1), jnp.float32),
        ),
        compiler_params=cp1,
    )(node_ids, src_p, trg_p, x, w)

    # ---- Kernel 2: fused neighborhood softmax (pass 0 = denominator, pass 1 = normalize) ----
    attn_he = pl.pallas_call(
        functools.partial(_softmax_kernel, E, 1.0 / E),
        grid=(2, g),
        in_specs=[
            pl.BlockSpec((N, 1), lambda p, i: (0, 0)),
            pl.BlockSpec((H, tile_e), lambda p, i: (0, i)),
            pl.BlockSpec((1, tile_e), lambda p, i: (0, i)),
            pl.BlockSpec((H, 1), lambda p, i: (0, 0)),
            pl.BlockSpec((H, 1), lambda p, i: (0, 0)),
        ],
        out_specs=pl.BlockSpec((H, tile_e), lambda p, i: (0, i)),
        out_shape=jax.ShapeDtypeStruct((H, e_pad), jnp.float32),
        scratch_shapes=[pltpu.VMEM((H, N), jnp.float32)],   # persistent denom across the grid
        compiler_params=cp2,
    )(node_ids, d_he, trg_p, dsum, dmin)

    # Layout plumbing back to the module's output shapes (single wrapper-side transposes).
    attn = attn_he[:, :E].T.reshape(E, H, 1)
    x_src_out = x_src_t[:, :E].T.reshape(E, 1, F).astype(nodes_features.dtype)
    return attn, x_src_out


def _reference_forward(nodes_features, edge_index, edge_w, dist_w):
    """Pure-JAX mirror of the PyTorch Attention_Distance forward."""
    trg, src = edge_index[0], edge_index[1]
    x_src = nodes_features[src]                     # (E,1,F)
    x_trg = nodes_features[trg]
    ev = x_trg - x_src                              # (E,1,F)
    evw = ev * edge_w                               # (E,H,F)
    d = ((evw * evw) * dist_w).sum(-1)              # (E,H)
    mean = d.mean(axis=0, keepdims=True)            # (1,H)
    z = d + mean
    scores = -1.0 * jnp.where(z > 0, z, 0.2 * z)
    scores = scores - scores.max()
    p = jnp.exp(scores)
    n = nodes_features.shape[0]
    denom = jnp.zeros((n, p.shape[1]), p.dtype).at[trg].add(p)[trg]
    attn = (p / (denom + 1e-16))[:, :, None]        # (E,H,1)
    return attn, x_src


if __name__ == "__main__":
    key = jax.random.PRNGKey(0)
    N, F, H, k = 16, 32, 4, 4                       # nodes, num_features_diffusion, heads, neighbors

    kx, ks, kt = jax.random.split(key, 3)
    nodes_features = jax.random.normal(kx, (N, 1, F), dtype=jnp.float32)

    # Deterministic ring graph: node i is target of edges from sources (i+1..i+k) mod N.
    trg = jnp.repeat(jnp.arange(N, dtype=jnp.int32), k)
    src = (trg + jnp.tile(jnp.arange(1, k + 1, dtype=jnp.int32), N)) % N
    edge_index = jnp.stack([trg, src], axis=0)      # (2, E): row0 = trg, row1 = src
    E = edge_index.shape[1]

    # xavier_uniform for (1, H, F): fan_in = H*F, fan_out = 1*F
    bound = math.sqrt(6.0 / (H * F + F))
    edge_dims_weights = jax.random.uniform(ks, (1, H, F), jnp.float32, -bound, bound)
    distance_dims_weights = jax.random.uniform(kt, (1, H, F), jnp.float32, -bound, bound)

    attn, x_src = attention_distance_forward(nodes_features, edge_index,
                                             edge_dims_weights, distance_dims_weights)
    attn = jax.block_until_ready(attn)
    x_src = jax.block_until_ready(x_src)

    ref_attn, ref_src = _reference_forward(nodes_features, edge_index,
                                           edge_dims_weights, distance_dims_weights)

    assert attn.shape == (E, H, 1)
    assert x_src.shape == (E, 1, F)
    err_a = float(jnp.max(jnp.abs(attn - ref_attn)))
    err_s = float(jnp.max(jnp.abs(x_src - ref_src)))
    assert jnp.allclose(attn, ref_attn, atol=1e-4, rtol=1e-4), err_a
    assert jnp.allclose(x_src, ref_src, atol=1e-4, rtol=1e-4), err_s

    print("KERNEL_OK")
</pallas_src>

<mosaic_0001>
module attributes {stable_mosaic.version = 11 : i64} {
  func.func @_dist_gather_kernel(%arg0: i32, %arg1: memref<16x1xi32, #tpu.memory_space<vmem>>, %arg2: memref<1x128xi32, #tpu.memory_space<vmem>>, %arg3: memref<1x128xi32, #tpu.memory_space<vmem>>, %arg4: memref<16x32xf32, #tpu.memory_space<vmem>>, %arg5: memref<4x32xf32, #tpu.memory_space<vmem>>, %arg6: memref<4x128xf32, #tpu.memory_space<vmem>>, %arg7: memref<32x128xf32, #tpu.memory_space<vmem>>, %arg8: memref<4x1xf32, #tpu.memory_space<vmem>>, %arg9: memref<4x1xf32, #tpu.memory_space<vmem>>) attributes {dimension_semantics = [#tpu.dimension_semantics<arbitrary>], iteration_bounds = array<i64: 1>, scalar_prefetch = 0 : i64, scratch_operands = 0 : i64, tpu.core_type = #tpu.core_type<tc>, window_params = [{pipeline_mode = #tpu.pipeline_mode<synchronous>, transform_indices = @transform_0, window_bounds = array<i64: 16, 1>}, {transform_indices = @transform_1, window_bounds = array<i64: 1, 128>}, {transform_indices = @transform_2, window_bounds = array<i64: 1, 128>}, {pipeline_mode = #tpu.pipeline_mode<synchronous>, transform_indices = @transform_3, window_bounds = array<i64: 16, 32>}, {pipeline_mode = #tpu.pipeline_mode<synchronous>, transform_indices = @transform_4, window_bounds = array<i64: 4, 32>}, {transform_indices = @transform_5, window_bounds = array<i64: 4, 128>}, {transform_indices = @transform_6, window_bounds = array<i64: 32, 128>}, {pipeline_mode = #tpu.pipeline_mode<synchronous>, transform_indices = @transform_7, window_bounds = array<i64: 4, 1>}, {pipeline_mode = #tpu.pipeline_mode<synchronous>, transform_indices = @transform_8, window_bounds = array<i64: 4, 1>}]} {
    %c0 = arith.constant 0 : index
    %c0_0 = arith.constant 0 : index
    %0 = vector.load %arg4[%c0, %c0_0] : memref<16x32xf32, #tpu.memory_space<vmem>>, vector<16x32xf32>
    %c0_1 = arith.constant 0 : index
    %c0_2 = arith.constant 0 : index
    %1 = vector.load %arg1[%c0_1, %c0_2] : memref<16x1xi32, #tpu.memory_space<vmem>>, vector<16x1xi32>
    %c0_3 = arith.constant 0 : index
    %c0_4 = arith.constant 0 : index
    %2 = vector.load %arg2[%c0_3, %c0_4] : memref<1x128xi32, #tpu.memory_space<vmem>>, vector<1x128xi32>
    %c0_5 = arith.constant 0 : index
    %c0_6 = arith.constant 0 : index
    %3 = vector.load %arg3[%c0_5, %c0_6] : memref<1x128xi32, #tpu.memory_space<vmem>>, vector<1x128xi32>
    %4 = tpu.concatenate %2, %3 in 1 : vector<1x128xi32>, vector<1x128xi32> -> vector<1x256xi32>
    %5 = vector.broadcast %1 : vector<16x1xi32> to vector<16x256xi32>
    %6 = vector.broadcast %4 : vector<1x256xi32> to vector<16x256xi32>
    %7 = arith.cmpi eq, %5, %6 : vector<16x256xi32>
    %8 = arith.extui %7 : vector<16x256xi1> to vector<16x256xi32>
    %9 = arith.sitofp %8 : vector<16x256xi32> to vector<16x256xf32>
    %cst = arith.constant dense<0.000000e+00> : vector<32x256xf32>
    %10 = tpu.matmul %0, %9, %cst {dimension_numbers = #tpu.dot_dimension_numbers<[0], [0], [1], [1], [0, 1, 1, 1], [], []>} : vector<16x32xf32>, vector<16x256xf32>, vector<32x256xf32> -> vector<32x256xf32>
    %11 = vector.extract_strided_slice %10 {offsets = [0, 0], sizes = [32, 128], strides = [1, 1]} : vector<32x256xf32> to vector<32x128xf32>
    %12 = vector.extract_strided_slice %10 {offsets = [0, 128], sizes = [32, 128], strides = [1, 1]} : vector<32x256xf32> to vector<32x128xf32>
    %c0_7 = arith.constant 0 : index
    %c0_8 = arith.constant 0 : index
    %13 = vector.load %arg7[%c0_7, %c0_8] : memref<32x128xf32, #tpu.memory_space<vmem>>, vector<32x128xf32>
    tpu.vector_store %arg7[%c0_7, %c0_8], %11 {strides = array<i32>} : memref<32x128xf32, #tpu.memory_space<vmem>>, vector<32x128xf32>,
    %14 = arith.subf %12, %11 : vector<32x128xf32>
    %15 = arith.mulf %14, %14 : vector<32x128xf32>
    %c0_9 = arith.constant 0 : index
    %c0_10 = arith.constant 0 : index
    %16 = vector.load %arg5[%c0_9, %c0_10] : memref<4x32xf32, #tpu.memory_space<vmem>>, vector<4x32xf32>
    %cst_11 = arith.constant dense<0.000000e+00> : vector<4x128xf32>
    %17 = tpu.matmul %16, %15, %cst_11 {dimension_numbers = #tpu.dot_dimension_numbers<[1], [0], [0], [1], [0, 0, 1, 1], [], []>} : vector<4x32xf32>, vector<32x128xf32>, vector<4x128xf32> -> vector<4x128xf32>
    %c0_12 = arith.constant 0 : index
    %c0_13 = arith.constant 0 : index
    %18 = vector.load %arg6[%c0_12, %c0_13] : memref<4x128xf32, #tpu.memory_space<vmem>>, vector<4x128xf32>
    tpu.vector_store %arg6[%c0_12, %c0_13], %17 {strides = array<i32>} : memref<4x128xf32, #tpu.memory_space<vmem>>, vector<4x128xf32>,
    %19 = tpu.iota {dimensions = array<i32: 1>} : vector<1x128xi32>
    %c128_i32 = arith.constant 128 : i32
    %20 = arith.muli %arg0, %c128_i32 : i32
    %21 = vector.broadcast %20 : i32 to vector<1x128xi32>
    %22 = arith.addi %21, %19 : vector<1x128xi32>
    %c64_i32 = arith.constant 64 : i32
    %23 = vector.broadcast %c64_i32 : i32 to vector<1x128xi32>
    %24 = arith.cmpi slt, %22, %23 : vector<1x128xi32>
    %c0_i32 = arith.constant 0 : i32
    %25 = arith.cmpi eq, %arg0, %c0_i32 : i32
    %26 = arith.extui %25 : i1 to i32
    %c0_i32_14 = arith.constant 0 : i32
    %27 = arith.cmpi ne, %26, %c0_i32_14 : i32
    scf.if %27 {
      %cst_27 = arith.constant 0.000000e+00 : f32
      %46 = vector.broadcast %cst_27 : f32 to vector<4x1xf32>
      %c0_28 = arith.constant 0 : index
      %c0_29 = arith.constant 0 : index
      %47 = vector.load %arg8[%c0_28, %c0_29] : memref<4x1xf32, #tpu.memory_space<vmem>>, vector<4x1xf32>
      tpu.vector_store %arg8[%c0_28, %c0_29], %46 {strides = array<i32>} : memref<4x1xf32, #tpu.memory_space<vmem>>, vector<4x1xf32>,
      %cst_30 = arith.constant 0x7F800000 : f32
      %48 = vector.broadcast %cst_30 : f32 to vector<4x1xf32>
      %c0_31 = arith.constant 0 : index
      %c0_32 = arith.constant 0 : index
      %49 = vector.load %arg9[%c0_31, %c0_32] : memref<4x1xf32, #tpu.memory_space<vmem>>, vector<4x1xf32>
      tpu.vector_store %arg9[%c0_31, %c0_32], %48 {strides = array<i32>} : memref<4x1xf32, #tpu.memory_space<vmem>>, vector<4x1xf32>,
    } else {
    }
    %c0_15 = arith.constant 0 : index
    %c0_16 = arith.constant 0 : index
    %28 = vector.load %arg8[%c0_15, %c0_16] : memref<4x1xf32, #tpu.memory_space<vmem>>, vector<4x1xf32>
    %cst_17 = arith.constant 0.000000e+00 : f32
    %29 = vector.shape_cast %24 : vector<1x128xi1> to vector<1x128xi1>
    %30 = vector.broadcast %29 : vector<1x128xi1> to vector<4x128xi1>
    %31 = vector.broadcast %cst_17 : f32 to vector<4x128xf32>
    %32 = arith.select %30, %17, %31 : vector<4x128xi1>, vector<4x128xf32>
    %cst_18 = arith.constant dense<0.000000e+00> : vector<4xf32>
    %33 = vector.multi_reduction <add>, %32, %cst_18 [1] : vector<4x128xf32> to vector<4xf32>
    %34 = vector.shape_cast %33 : vector<4xf32> to vector<4x1xf32>
    %35 = arith.addf %28, %34 : vector<4x1xf32>
    %c0_19 = arith.constant 0 : index
    %c0_20 = arith.constant 0 : index
    %36 = vector.load %arg8[%c0_19, %c0_20] : memref<4x1xf32, #tpu.memory_space<vmem>>, vector<4x1xf32>
    tpu.vector_store %arg8[%c0_19, %c0_20], %35 {strides = array<i32>} : memref<4x1xf32, #tpu.memory_space<vmem>>, vector<4x1xf32>,
    %c0_21 = arith.constant 0 : index
    %c0_22 = arith.constant 0 : index
    %37 = vector.load %arg9[%c0_21, %c0_22] : memref<4x1xf32, #tpu.memory_space<vmem>>, vector<4x1xf32>
    %cst_23 = arith.constant 0x7F800000 : f32
    %38 = vector.shape_cast %24 : vector<1x128xi1> to vector<1x128xi1>
    %39 = vector.broadcast %38 : vector<1x128xi1> to vector<4x128xi1>
    %40 = vector.broadcast %cst_23 : f32 to vector<4x128xf32>
    %41 = arith.select %39, %17, %40 : vector<4x128xi1>, vector<4x128xf32>
    %cst_24 = arith.constant dense<0x7F800000> : vector<4xf32>
    %42 = vector.multi_reduction <minimumf>, %41, %cst_24 [1] : vector<4x128xf32> to vector<4xf32>
    %43 = vector.shape_cast %42 : vector<4xf32> to vector<4x1xf32>
    %44 = arith.minimumf %37, %43 : vector<4x1xf32>
    %c0_25 = arith.constant 0 : index
    %c0_26 = arith.constant 0 : index
    %45 = vector.load %arg9[%c0_25, %c0_26] : memref<4x1xf32, #tpu.memory_space<vmem>>, vector<4x1xf32>
    tpu.vector_store %arg9[%c0_25, %c0_26], %44 {strides = array<i32>} : memref<4x1xf32, #tpu.memory_space<vmem>>, vector<4x1xf32>,
    return
  }
  func.func @transform_0(%arg0: i32) -> (i32, i32) {
    %c0_i32 = arith.constant 0 : i32
    %c0_i32_0 = arith.constant 0 : i32
    %c0_i32_1 = arith.constant 0 : i32
    return %c0_i32, %c0_i32_0 : i32, i32
  }
  func.func @transform_1(%arg0: i32) -> (i32, i32) {
    %c0_i32 = arith.constant 0 : i32
    %c0_i32_0 = arith.constant 0 : i32
    return %c0_i32, %arg0 : i32, i32
  }
  func.func @transform_2(%arg0: i32) -> (i32, i32) {
    %c0_i32 = arith.constant 0 : i32
    %c0_i32_0 = arith.constant 0 : i32
    return %c0_i32, %arg0 : i32, i32
  }
  func.func @transform_3(%arg0: i32) -> (i32, i32) {
    %c0_i32 = arith.constant 0 : i32
    %c0_i32_0 = arith.constant 0 : i32
    %c0_i32_1 = arith.constant 0 : i32
    return %c0_i32, %c0_i32_0 : i32, i32
  }
  func.func @transform_4(%arg0: i32) -> (i32, i32) {
    %c0_i32 = arith.constant 0 : i32
    %c0_i32_0 = arith.constant 0 : i32
    %c0_i32_1 = arith.constant 0 : i32
    return %c0_i32, %c0_i32_0 : i32, i32
  }
  func.func @transform_5(%arg0: i32) -> (i32, i32) {
    %c0_i32 = arith.constant 0 : i32
    %c0_i32_0 = arith.constant 0 : i32
    return %c0_i32, %arg0 : i32, i32
  }
  func.func @transform_6(%arg0: i32) -> (i32, i32) {
    %c0_i32 = arith.constant 0 : i32
    %c0_i32_0 = arith.constant 0 : i32
    return %c0_i32, %arg0 : i32, i32
  }
  func.func @transform_7(%arg0: i32) -> (i32, i32) {
    %c0_i32 = arith.constant 0 : i32
    %c0_i32_0 = arith.constant 0 : i32
    %c0_i32_1 = arith.constant 0 : i32
    return %c0_i32, %c0_i32_0 : i32, i32
  }
  func.func @transform_8(%arg0: i32) -> (i32, i32) {
    %c0_i32 = arith.constant 0 : i32
    %c0_i32_0 = arith.constant 0 : i32
    %c0_i32_1 = arith.constant 0 : i32
    return %c0_i32, %c0_i32_0 : i32, i32
  }
}

</mosaic_0001>

<bundles_post_ra>
// kernel: tpu_custom_call.1
= control target key start
LH: loop header
LB: loop body
LE: loop exit
PB: predicated region body
PF: predicated region fallthrough
CT: control target
= control target key end

     0   :  { %14 = vsyncpa [#allocation3], 0  ;;  %v449_v2 = vmov 0   ;;  %s578_s0 = inlined_call_operand.vmem [shape: s32[16,1], index: 0, kind: input, shape index: {}]   ;;  %s579_s1 = inlined_call_operand.vmem [shape: s32[1,128], index: 1, kind: input, shape index: {}]   ;;  %s580_s2 = inlined_call_operand.vmem [shape: s32[1,128], index: 2, kind: input, shape index: {}]   ;;  %s581_s3 = inlined_call_operand.vmem [shape: f32[16,32], index: 3, kind: input, shape index: {}]   ;;  %s582_s4 = inlined_call_operand.vmem [shape: f32[4,32], index: 4, kind: input, shape index: {}]   ;;  %s583_s5 = inlined_call_operand.hbm [shape: f32[4,128], index: 5, kind: output, shape index: {0}]   ;;  %s584_s6 = inlined_call_operand.hbm [shape: f32[32,128], index: 6, kind: output, shape index: {1}]   ;;  %s585_s7 = inlined_call_operand.vmem [shape: f32[4,1], index: 7, kind: output, shape index: {2}]   ;;  %s586_s8 = inlined_call_operand.vmem [shape: f32[4,1], index: 8, kind: output, shape index: {3}]  }
   0x1   :  { %v28_v0 = vld [vmem:[%s578_s0] sm:$0xff]  ;;  %400 = vset.pattern.permute.xlu0 %v449_v2  ;;  %v27_v3 = vld [vmem:[%s581_s3 + $0x8] sm:$0xff] }
   0x2   :  { %v26_v1 = vld [vmem:[%s581_s3] sm:$0xff]  ;;  %33 = vperm.xlu0 %400, %v28_v0  }
   0x3   :  { %58 = vxpose.xlu1.b32.start [1/2] (short) (narrow) %v26_v1, 32 }
   0x4   :  { %15 = vsyncpa [#allocation5], 0  ;;  %v29_v4 = vld [vmem:[%s578_s0 + $0x8] sm:$0xff]  ;;  %v450_v5 = vmov 0.0   ;;  %v350_v7 = vld [vmem:[%s580_s2] ss:$0 sm:$0xff]  ;;  %v280_v36 = vlaneseq }
   0x5   :  { %167 = vmatprep.mubr.f32.mxu0 %v450_v5  ;;  %v349_v9 = vld [vmem:[%s579_s1] ss:$0 sm:$0xff]  ;;  %v451_v11 = vmov 1.0|1.0   ;;  %vm90_vm6 = vcmask 130048   ;;  %v452_v15 = vmov 0.0|0.0  }
   0x6   :  { %36 = vperm.xlu0 %400, %v29_v4   ;;  %384 = vmatprep.subr.bf16.mxu1 %v452_v15  ;;  %vm453_vm7 = vmmov 0   ;;  %v204_v34 = vld [vmem:[%s582_s4] sm:$0xf]  ;;  %vm205_vm8 = vcmask 261120   ;;  %vm290_vm9 = vcmask 3072   ;;  %v454_v35 = vmov inf  }
   0x7   :  { %59 = vxpose.xlu1.b32.end [2/2] (short) (narrow) %v27_v3, 32  ;;  %377 = vmatprep.mubr.msk.f32.mxu1 %vm453_vm7, %v450_v5  ;;  %292 = vst.msk [vmem:[%s586_s8] sm:$0xf] %vm290_vm9, %v454_v35  ;;  %291 = vst.msk [vmem:[%s585_s7] sm:$0xf] %vm290_vm9, %v450_v5  ;;  %v281_v37 = vand.u32 127, %v280_v36 }
   0x8   :  { %vm297_vm11 = vcmask 1043456   ;;  %s455_s4 = smov [#allocation2]   ;;  %s456_s20 = smov [#allocation4]  }
   0x9   :  { %vm285_vm10 = vcmp.lt.s32.totalorder %v281_v37, 64  ;;  %s317_s19 = sshll.u32 %s455_s4, 4  ;;  %s326_s21 = sshll.u32 %s456_s20, 4  ;;  %s318_s19 = int_to_ptr.vmem [resolvable:$true] %s317_s19  ;;  %s533_s21 = int_to_ptr.vmem [resolvable:$true] %s326_s21 }
   0xa   :  { %s401_s22 = scalar_lea.vmem %s318_s19, 64  ;;  %p406_p1 = scmp.lt.s32.totalorder %s318_s19, %s318_s19 }
   0xb   :  { %p402_p0 = scmp.ne.s32.totalorder %s318_s19, %s401_s22  ;;  %p407_p2 = scmp.lt.s32.totalorder %s401_s22, %s401_s22 }
   0xd   :  { %p408_p3 = por %p407_p2, %p406_p1 }
   0xf   :  { %p409_p4 = pnand %p408_p3, %p402_p0 }
  0x81   :  { %v34_v6 = vpop.permute.xlu0 %33 }
  0x82   :  { %vm47_vm1 = vcmp.eq.s32.totalorder %v34_v6, %v350_v7  ;;  %vm46_vm3 = vcmp.eq.s32.totalorder %v34_v6, %v349_v9 }
  0x83   :  { %v74_v8 = vpop.trf.xlu1 }
  0x85   :  { %v37_v10 = vpop.permute.xlu0 %36 }
  0x86   :  { %vm48_vm0 = vcmp.eq.s32.totalorder %v37_v10, %v349_v9  ;;  %vm49_vm2 = vcmp.eq.s32.totalorder %v37_v10, %v350_v7 }
  0x87   :  { %vm380_vm4 = vmpackc.low %vm49_vm2, %vm47_vm1  ;;  %v75_v12 = vpop.trf.xlu1 }
  0x88   :  { %381 = vmatprep.subr.msk.bf16.mxu0 %vm380_vm4, %v451_v11  ;;  %vm382_vm5 = vmpackc.low %vm48_vm0, %vm46_vm3 }
  0x89   :  { %383 = vmatpush1.bf16.msk.msra.mxu0 %vm382_vm5, %v451_v11 }
  0x8b   :  { %v76_v13 = vpop.trf.xlu1 }
  0x8c   :  { %359 = vmatmul.mubr.msk.f32.vlgmr.msra.gmra.mrb[0].mxu0 %vm90_vm6, %v74_v8 }
  0x8d   :  { %173 = vmatprep.mubr.f32.mxu0 %v450_v5 }
  0x8f   :  { %v77_v14 = vpop.trf.xlu1 }
  0x90   :  { %360 = vmatmul.mubr.msk.f32.gmra.mrb[2].mxu0 %vm90_vm6, %v75_v12 }
  0x91   :  { %179 = vmatprep.mubr.f32.mxu0 %v450_v5 }
  0x94   :  { %361 = vmatmul.mubr.msk.f32.gmra.mrb[4].mxu0 %vm90_vm6, %v76_v13 }
  0x95   :  { %185 = vmatprep.mubr.f32.mxu0 %v450_v5 }
  0x98   :  { %362 = vmatmul.mubr.msk.f32.gmra.mrb[6].mxu0 %vm90_vm6, %v77_v14 }
 0x15f   :  { %v169_v16 = vpop.f32.mrb[0].mxu0 }
 0x160   :  { %192 = vst [vmem:[#allocation4] sm:$0xff] %v169_v16  ;;  %v171_v17 = vpop.f32.mrb[1].mxu0 }
 0x161   :  { %v196_v18 = vsub.f32 %v171_v17, %v169_v16 }
 0x163   :  { %v175_v19 = vpop.f32.mrb[2].mxu0  ;;  %v200_v22 = vmul.f32 %v196_v18, %v196_v18 }
 0x164   :  { %193 = vst [vmem:[#allocation4 + $0x8] sm:$0xff] %v175_v19  ;;  %v177_v20 = vpop.f32.mrb[3].mxu0 }
 0x165   :  { %v197_v21 = vsub.f32 %v177_v20, %v175_v19 }
 0x167   :  { %v201_v23 = vmul.f32 %v197_v21, %v197_v21  ;;  %v181_v24 = vpop.f32.mrb[4].mxu0 }
 0x168   :  { %194 = vst [vmem:[#allocation4 + $0x10] sm:$0xff] %v181_v24  ;;  %v183_v25 = vpop.f32.mrb[5].mxu0 }
 0x169   :  { %v198_v26 = vsub.f32 %v183_v25, %v181_v24  ;;  %v385_v27 = vpack.c.bf16 %v201_v23, %v200_v22 }
 0x16b   :  { %v187_v28 = vpop.f32.mrb[6].mxu0  ;;  %386 = vmatpush3.bf16.msra.mxu1 %v385_v27  ;;  %v202_v31 = vmul.f32 %v198_v26, %v198_v26 }
 0x16c   :  { %195 = vst [vmem:[#allocation4 + $0x18] sm:$0xff] %v187_v28  ;;  %v189_v29 = vpop.f32.mrb[7].mxu0  ;;  %387 = vmatprep.subr.bf16.mxu1 %v452_v15 }
 0x16d   :  { %v199_v30 = vsub.f32 %v189_v29, %v187_v28 }
 0x16f   :  { %v203_v32 = vmul.f32 %v199_v30, %v199_v30 }
 0x171   :  { %v388_v33 = vpack.c.bf16 %v203_v32, %v202_v31 }
 0x173   :  { %389 = vmatpush3.bf16.msra.mxu1 %v388_v33 }
 0x176   :  { %378 = vmatmul.mubr.msk.f32.vlgmr.msra.gmra.mrb[0].mxu1 %vm205_vm8, %v204_v34 }
 0x249   :  { %v275_v38 = vpop.f32.mrb[0].mxu1 }
 0x24a   :  { %279 = vst [vmem:[#allocation2] sm:$0xf] %v275_v38  ;;  %v379_v39 = vpop.f32.mrb[1].mxu1  ;;  %v305_v40 = vsel %vm285_vm10, %v275_v38, inf  ;;  %v296_v41 = vsel %vm285_vm10, %v275_v38, 0.0 }
 0x24b   :  { %v306_v42 = vsel %vm297_vm11, %v305_v40, inf  ;;  %v298_v43 = vsel %vm297_vm11, %v296_v41, 0.0 }
 0x24c   :  { %307 = vmin.xlane.f32.xlu1 %v306_v42  ;;  %299 = vadd.xlane.f32.xlu0 %v298_v43 }
 0x24d   :  { %412 = shalt.err (!%p409_p4)
}
 0x24e   :  { %s413_s25 = scalar_lea.hbm %s583_s5, 64 }
 0x24f   :  { %p414_p5 = scmp.ne.s32.totalorder %s583_s5, %s413_s25  ;;  %p417_p6 = scmp.lt.u32.totalorder %s413_s25, %s583_s5 }
 0x251   :  { %p419_p7 = pnand %p417_p6, %p414_p5 }
 0x253   :  { %422 = shalt.err (!%p419_p7)
}
 0x254   :  { %320 = dma.vmem_to_hbm [thread:$0]  %s318_s19, 64, %s583_s5, [#allocation3]  }
 0x255   :  { %s423_s10 = scalar_lea.vmem %s533_s21, 512  ;;  %p428_p9 = scmp.lt.s32.totalorder %s533_s21, %s533_s21 }
 0x256   :  { %p424_p8 = scmp.ne.s32.totalorder %s533_s21, %s423_s10  ;;  %p429_p10 = scmp.lt.s32.totalorder %s423_s10, %s423_s10 }
 0x258   :  { %p430_p11 = por %p429_p10, %p428_p9 }
 0x25a   :  { %p431_p12 = pnand %p430_p11, %p424_p8 }
 0x25c   :  { %434 = shalt.err (!%p431_p12)
}
 0x25d   :  { %s435_s13 = scalar_lea.hbm %s584_s6, 512 }
 0x25e   :  { %p436_p13 = scmp.ne.s32.totalorder %s584_s6, %s435_s13  ;;  %p439_p0 = scmp.lt.u32.totalorder %s435_s13, %s584_s6 }
 0x260   :  { %p441_p1 = pnand %p439_p0, %p436_p13 }
 0x262   :  { %444 = shalt.err (!%p441_p1)
}
 0x263   :  { %s457_s5 = smov 128   ;;  %s458_s1 = smov 8   ;;  %v304_v44 = vld [vmem:[%s586_s8] sm:$0xf] }
 0x264   :  { %332 = dma.vmem_to_hbm [thread:$0]  %s533_s21, 512, %s584_s6, [#allocation5], %s457_s5, %s457_s5, %s458_s1  }
 0x265   :  { %v293_v45 = vld [vmem:[%s585_s7] sm:$0xf] }
 0x2d9   :  { %v308_v46 = vpop.xlane.xlu1 %307  ;;  %v300_v47 = vpop.xlane.xlu0 %299 }
 0x2da   :  { %v309_v48 = vmin.f32 %v304_v44, %v308_v46  ;;  %v301_v49 = vadd.f32 %v300_v47, %v293_v45 }
 0x2dc   :  { %310 = vst.msk [vmem:[%s586_s8] sm:$0xf] %vm290_vm9, %v309_v48  ;;  %303 = vst.msk [vmem:[%s585_s7] sm:$0xf] %vm290_vm9, %v301_v49 }
 0x2dd   :  { %445 = dma.done.wait [#allocation3], 64  }
 0x2de   :  { %446 = vsyncadd [#allocation3], 4294967232 }
 0x2df   :  { %447 = dma.done.wait [#allocation5], 512  }
 0x2e0   :  { %448 = vsyncadd [#allocation5], 4294966784 }
 0x2e1   :  { %347 = vsyncpa [#allocation3], 1 }
 0x2e2   :  { %348 = vsyncpa [#allocation5], 1 }

</bundles_post_ra>
